<compile_context>
chip_gen: v7x
topology: tpu7x:2x2x1
jax: 0.10.0
libtpu: 0.0.40
codegen_flags: <defaults>
</compile_context>

<pallas_src>
import functools

import jax
import jax.numpy as jnp
from jax.experimental import pallas as pl
from jax.experimental.pallas import tpu as pltpu


def _round_up(v, m):
    return (v + m - 1) // m * m


def _vgae_encoder_kernel(x_ref, w1_ref, b1_ref, wcat_ref, bcat_ref,
                         mu_ref, lv_ref):
    # h = relu(x @ W1 + b1)                      (tm, HID), f32 accumulate (MXU)
    h = jnp.dot(x_ref[...], w1_ref[...], preferred_element_type=jnp.float32)
    h = jnp.maximum(h + b1_ref[...], 0.0)
    # Fused projection: [mu | logvar] = h @ [Wmu | Wlv] + [bmu | blv]
    out = jnp.dot(h, wcat_ref[...], preferred_element_type=jnp.float32) + bcat_ref[...]
    oc = mu_ref.shape[1]
    mu_ref[...] = out[:, :oc].astype(mu_ref.dtype)
    lv_ref[...] = out[:, oc:].astype(lv_ref.dtype)


def fuse_projection_params(wmu, bmu, wlv, blv):
    """Fuse mu/logvar projection weights ONCE at parameter-prep time
    (kept out of the per-call jitted path)."""
    wcat = jnp.concatenate([wmu, wlv], axis=1)   # (HID, 2*OUT)
    bcat = jnp.concatenate([bmu, blv], axis=1)   # (1,   2*OUT)
    return wcat, bcat


def _pick_row_tile(n, tm_max):
    """Row tile: multiple of 8 (f32 sublane).  Small N -> one tile; large N ->
    big tiles (amortize ~0.35 us/step) but >=2 grid steps for v7x megacore."""
    n8 = _round_up(n, 8)
    if n8 <= 512:
        return n8
    return max(512, min(tm_max, _round_up(pl.cdiv(n8, 2), 256)))


@functools.partial(jax.jit, static_argnames=("tm_max",))
def vgae_encoder(x, w1, b1, wcat, bcat, *, tm_max=4096):
    """x: (N, C_in); w1: (C_in, HID); b1: (1, HID);
    wcat: (HID, 2*OUT) = [Wmu | Wlv]; bcat: (1, 2*OUT) = [bmu | blv]."""
    n, c_in = x.shape
    hid = w1.shape[1]
    out2 = wcat.shape[1]
    oc = out2 // 2

    tm = _pick_row_tile(n, tm_max)
    grid = (pl.cdiv(n, tm),)   # partial last block: Pallas masks output writes

    def const_spec(a):
        # Whole array, same block every grid step -> stays VMEM-resident.
        nd = a.ndim
        return pl.BlockSpec(a.shape, lambda i, _nd=nd: (0,) * _nd)

    cost = pl.CostEstimate(
        flops=2 * n * (c_in * hid + hid * out2),
        transcendentals=0,
        bytes_accessed=4 * (n * (c_in + out2)
                            + c_in * hid + hid * out2 + hid + out2),
    )

    mu, logvar = pl.pallas_call(
        _vgae_encoder_kernel,
        out_shape=(jax.ShapeDtypeStruct((n, oc), x.dtype),
                   jax.ShapeDtypeStruct((n, oc), x.dtype)),
        grid=grid,
        in_specs=[
            pl.BlockSpec((tm, c_in), lambda i: (i, 0)),   # x: tiled over rows
            const_spec(w1), const_spec(b1),               # resident weights
            const_spec(wcat), const_spec(bcat),
        ],
        out_specs=(pl.BlockSpec((tm, oc), lambda i: (i, 0)),
                   pl.BlockSpec((tm, oc), lambda i: (i, 0))),
        compiler_params=pltpu.CompilerParams(
            dimension_semantics=("parallel",),
        ),
        cost_estimate=cost,
    )(x, w1, b1, wcat, bcat)
    return mu, logvar


def _init_linear(key, fan_in, fan_out, dtype=jnp.float32):
    """Deterministic PyTorch-style nn.Linear init: U(-1/sqrt(fan_in), +)."""
    kw, kb = jax.random.split(key)
    bound = 1.0 / jnp.sqrt(jnp.asarray(fan_in, dtype))
    # stored transposed: (fan_in, fan_out) so the kernel does x @ W directly
    w = jax.random.uniform(kw, (fan_in, fan_out), dtype, -bound, bound)
    b = jax.random.uniform(kb, (1, fan_out), dtype, -bound, bound)
    return w, b


def _reference(x, w1, b1, wmu, bmu, wlv, blv):
    h = jnp.maximum(x @ w1 + b1, 0.0)
    return h @ wmu + bmu, h @ wlv + blv


if __name__ == "__main__":
    IN_CH, OUT_CH = 32, 16
    HID = 2 * IN_CH

    key = jax.random.PRNGKey(0)
    kx, k1, k2, k3, kx2, kx3 = jax.random.split(key, 6)

    w1, b1 = _init_linear(k1, IN_CH, HID)
    wmu, bmu = _init_linear(k2, HID, OUT_CH)
    wlv, blv = _init_linear(k3, HID, OUT_CH)
    wcat, bcat = fuse_projection_params(wmu, bmu, wlv, blv)   # once, outside jit

    # Small shape consistent with the module (single tile).
    N = 8
    x = jax.random.normal(kx, (N, IN_CH), jnp.float32)
    mu, logvar = vgae_encoder(x, w1, b1, wcat, bcat)
    jax.block_until_ready((mu, logvar))

    mu_ref, lv_ref = _reference(x, w1, b1, wmu, bmu, wlv, blv)
    assert mu.shape == (N, OUT_CH) and logvar.shape == (N, OUT_CH)
    assert jnp.allclose(mu, mu_ref, atol=1e-5), "mu mismatch (small)"
    assert jnp.allclose(logvar, lv_ref, atol=1e-5), "logvar mismatch (small)"

    # N not a multiple of 8: exercises masked partial output blocks.
    N2 = 300
    x2 = jax.random.normal(kx2, (N2, IN_CH), jnp.float32)
    mu2, lv2 = vgae_encoder(x2, w1, b1, wcat, bcat)
    jax.block_until_ready((mu2, lv2))
    mu2_ref, lv2_ref = _reference(x2, w1, b1, wmu, bmu, wlv, blv)
    assert mu2.shape == (N2, OUT_CH) and lv2.shape == (N2, OUT_CH)
    assert jnp.allclose(mu2, mu2_ref, atol=1e-5), "mu mismatch (partial tile)"
    assert jnp.allclose(lv2, lv2_ref, atol=1e-5), "logvar mismatch (partial tile)"

    # Larger N: multi-step grid (>=2 steps, big tiles) + partial last block.
    N3 = 3000
    x3 = jax.random.normal(kx3, (N3, IN_CH), jnp.float32)
    mu3, lv3 = vgae_encoder(x3, w1, b1, wcat, bcat)
    jax.block_until_ready((mu3, lv3))
    mu3_ref, lv3_ref = _reference(x3, w1, b1, wmu, bmu, wlv, blv)
    assert mu3.shape == (N3, OUT_CH) and lv3.shape == (N3, OUT_CH)
    assert jnp.allclose(mu3, mu3_ref, atol=1e-5), "mu mismatch (multi-tile)"
    assert jnp.allclose(lv3, lv3_ref, atol=1e-5), "logvar mismatch (multi-tile)"

    print("KERNEL_OK")
</pallas_src>

<mosaic_0001>
module attributes {stable_mosaic.version = 11 : i64} {
  func.func @_vgae_encoder_kernel(%arg0: i32, %arg1: memref<8x32xf32, #tpu.memory_space<vmem>>, %arg2: memref<32x64xf32, #tpu.memory_space<vmem>>, %arg3: memref<1x64xf32, #tpu.memory_space<vmem>>, %arg4: memref<64x32xf32, #tpu.memory_space<vmem>>, %arg5: memref<1x32xf32, #tpu.memory_space<vmem>>, %arg6: memref<8x16xf32, #tpu.memory_space<vmem>>, %arg7: memref<8x16xf32, #tpu.memory_space<vmem>>) attributes {dimension_semantics = [#tpu.dimension_semantics<parallel>], iteration_bounds = array<i64: 1>, scalar_prefetch = 0 : i64, scratch_operands = 0 : i64, tpu.core_type = #tpu.core_type<tc>, window_params = [{transform_indices = @transform_0, window_bounds = array<i64: 8, 32>}, {pipeline_mode = #tpu.pipeline_mode<synchronous>, transform_indices = @transform_1, window_bounds = array<i64: 32, 64>}, {pipeline_mode = #tpu.pipeline_mode<synchronous>, transform_indices = @transform_2, window_bounds = array<i64: 1, 64>}, {pipeline_mode = #tpu.pipeline_mode<synchronous>, transform_indices = @transform_3, window_bounds = array<i64: 64, 32>}, {pipeline_mode = #tpu.pipeline_mode<synchronous>, transform_indices = @transform_4, window_bounds = array<i64: 1, 32>}, {transform_indices = @transform_5, window_bounds = array<i64: 8, 16>}, {transform_indices = @transform_6, window_bounds = array<i64: 8, 16>}]} {
    %c0 = arith.constant 0 : index
    %c0_0 = arith.constant 0 : index
    %0 = vector.load %arg1[%c0, %c0_0] : memref<8x32xf32, #tpu.memory_space<vmem>>, vector<8x32xf32>
    %c0_1 = arith.constant 0 : index
    %c0_2 = arith.constant 0 : index
    %1 = vector.load %arg2[%c0_1, %c0_2] : memref<32x64xf32, #tpu.memory_space<vmem>>, vector<32x64xf32>
    %cst = arith.constant dense<0.000000e+00> : vector<8x64xf32>
    %2 = tpu.matmul %0, %1, %cst {dimension_numbers = #tpu.dot_dimension_numbers<[1], [0], [0], [1], [0, 0, 1, 1], [], []>} : vector<8x32xf32>, vector<32x64xf32>, vector<8x64xf32> -> vector<8x64xf32>
    %c0_3 = arith.constant 0 : index
    %c0_4 = arith.constant 0 : index
    %3 = vector.load %arg3[%c0_3, %c0_4] : memref<1x64xf32, #tpu.memory_space<vmem>>, vector<1x64xf32>
    %4 = vector.broadcast %3 : vector<1x64xf32> to vector<8x64xf32>
    %5 = arith.addf %2, %4 : vector<8x64xf32>
    %cst_5 = arith.constant 0.000000e+00 : f32
    %6 = vector.broadcast %cst_5 : f32 to vector<8x64xf32>
    %7 = arith.maximumf %5, %6 : vector<8x64xf32>
    %c0_6 = arith.constant 0 : index
    %c0_7 = arith.constant 0 : index
    %8 = vector.load %arg4[%c0_6, %c0_7] : memref<64x32xf32, #tpu.memory_space<vmem>>, vector<64x32xf32>
    %cst_8 = arith.constant dense<0.000000e+00> : vector<8x32xf32>
    %9 = tpu.matmul %7, %8, %cst_8 {dimension_numbers = #tpu.dot_dimension_numbers<[1], [0], [0], [1], [0, 0, 1, 1], [], []>} : vector<8x64xf32>, vector<64x32xf32>, vector<8x32xf32> -> vector<8x32xf32>
    %c0_9 = arith.constant 0 : index
    %c0_10 = arith.constant 0 : index
    %10 = vector.load %arg5[%c0_9, %c0_10] : memref<1x32xf32, #tpu.memory_space<vmem>>, vector<1x32xf32>
    %11 = vector.broadcast %10 : vector<1x32xf32> to vector<8x32xf32>
    %12 = arith.addf %9, %11 : vector<8x32xf32>
    %13 = vector.extract_strided_slice %12 {offsets = [0, 0], sizes = [8, 16], strides = [1, 1]} : vector<8x32xf32> to vector<8x16xf32>
    %c0_11 = arith.constant 0 : index
    %c0_12 = arith.constant 0 : index
    %14 = vector.load %arg6[%c0_11, %c0_12] : memref<8x16xf32, #tpu.memory_space<vmem>>, vector<8x16xf32>
    tpu.vector_store %arg6[%c0_11, %c0_12], %13 {strides = array<i32>} : memref<8x16xf32, #tpu.memory_space<vmem>>, vector<8x16xf32>,
    %15 = vector.extract_strided_slice %12 {offsets = [0, 16], sizes = [8, 16], strides = [1, 1]} : vector<8x32xf32> to vector<8x16xf32>
    %c0_13 = arith.constant 0 : index
    %c0_14 = arith.constant 0 : index
    %16 = vector.load %arg7[%c0_13, %c0_14] : memref<8x16xf32, #tpu.memory_space<vmem>>, vector<8x16xf32>
    tpu.vector_store %arg7[%c0_13, %c0_14], %15 {strides = array<i32>} : memref<8x16xf32, #tpu.memory_space<vmem>>, vector<8x16xf32>,
    return
  }
  func.func @transform_0(%arg0: i32) -> (i32, i32) {
    %c0_i32 = arith.constant 0 : i32
    %c0_i32_0 = arith.constant 0 : i32
    return %arg0, %c0_i32 : i32, i32
  }
  func.func @transform_1(%arg0: i32) -> (i32, i32) {
    %c0_i32 = arith.constant 0 : i32
    %c0_i32_0 = arith.constant 0 : i32
    %c0_i32_1 = arith.constant 0 : i32
    return %c0_i32, %c0_i32_0 : i32, i32
  }
  func.func @transform_2(%arg0: i32) -> (i32, i32) {
    %c0_i32 = arith.constant 0 : i32
    %c0_i32_0 = arith.constant 0 : i32
    %c0_i32_1 = arith.constant 0 : i32
    return %c0_i32, %c0_i32_0 : i32, i32
  }
  func.func @transform_3(%arg0: i32) -> (i32, i32) {
    %c0_i32 = arith.constant 0 : i32
    %c0_i32_0 = arith.constant 0 : i32
    %c0_i32_1 = arith.constant 0 : i32
    return %c0_i32, %c0_i32_0 : i32, i32
  }
  func.func @transform_4(%arg0: i32) -> (i32, i32) {
    %c0_i32 = arith.constant 0 : i32
    %c0_i32_0 = arith.constant 0 : i32
    %c0_i32_1 = arith.constant 0 : i32
    return %c0_i32, %c0_i32_0 : i32, i32
  }
  func.func @transform_5(%arg0: i32) -> (i32, i32) {
    %c0_i32 = arith.constant 0 : i32
    %c0_i32_0 = arith.constant 0 : i32
    return %arg0, %c0_i32 : i32, i32
  }
  func.func @transform_6(%arg0: i32) -> (i32, i32) {
    %c0_i32 = arith.constant 0 : i32
    %c0_i32_0 = arith.constant 0 : i32
    return %arg0, %c0_i32 : i32, i32
  }
}

</mosaic_0001>

<bundles_post_ra>
// kernel: vgae_encoder.1
= control target key start
LH: loop header
LB: loop body
LE: loop exit
PB: predicated region body
PF: predicated region fallthrough
CT: control target
= control target key end

     0   :  { %12 = vsyncpa [#allocation3], 0  ;;  %v355_v3 = vmov 0.0|0.0   ;;  %vm356_vm0 = vmmov 0   ;;  %v357_v6 = vmov 0.0   ;;  %s467_s0 = inlined_call_operand.vmem [shape: f32[8,32], index: 0, kind: input, shape index: {}]   ;;  %s468_s1 = inlined_call_operand.vmem [shape: f32[32,64], index: 1, kind: input, shape index: {}]   ;;  %s469_s2 = inlined_call_operand.vmem [shape: f32[1,64], index: 2, kind: input, shape index: {}]   ;;  %s470_s3 = inlined_call_operand.vmem [shape: f32[64,32], index: 3, kind: input, shape index: {}]   ;;  %s471_s4 = inlined_call_operand.vmem [shape: f32[1,32], index: 4, kind: input, shape index: {}]   ;;  %s472_s5 = inlined_call_operand.hbm [shape: f32[8,16], index: 5, kind: output, shape index: {0}]   ;;  %s473_s6 = inlined_call_operand.hbm [shape: f32[8,16], index: 6, kind: output, shape index: {1}]  }
   0x1   :  { %v25_v0 = vld [vmem:[%s468_s1] sm:$0xff]  ;;  %v26_v1 = vld [vmem:[%s468_s1 + $0x8] sm:$0xff]  ;;  %v27_v2 = vld [vmem:[%s468_s1 + $0x10] sm:$0xff]  ;;  %283 = vmatprep.subr.bf16.mxu0 %v355_v3  ;;  %261 = vmatprep.mubr.msk.f32.mxu0 %vm356_vm0, %v357_v6 }
   0x2   :  { %v284_v4 = vpack.c.bf16 %v26_v1, %v25_v0  ;;  %v28_v5 = vld [vmem:[%s468_s1 + $0x18] sm:$0xff]  ;;  %v111_v7 = vld [vmem:[%s470_s3] sm:$0xff]  ;;  %289 = vmatprep.subr.bf16.mxu1 %v355_v3  ;;  %v112_v8 = vld [vmem:[%s470_s3 + $0x8] sm:$0xff]  ;;  %280 = vmatprep.mubr.msk.f32.mxu1 %vm356_vm0, %v357_v6 }
   0x3   :  { %v113_v9 = vld [vmem:[%s470_s3 + $0x10] sm:$0xff]  ;;  %v114_v10 = vld [vmem:[%s470_s3 + $0x18] sm:$0xff]  ;;  %v287_v11 = vpack.c.bf16 %v28_v5, %v27_v2  ;;  %v290_v12 = vpack.c.bf16 %v112_v8, %v111_v7 }
   0x4   :  { %285 = vmatpush3.bf16.msra.mxu0 %v284_v4 }
   0x5   :  { %286 = vmatprep.subr.bf16.mxu0 %v355_v3 }
   0x6   :  { %13 = vsyncpa [#allocation5], 0  ;;  %291 = vmatpush3.bf16.msra.mxu1 %v290_v12  ;;  %v293_v13 = vpack.c.bf16 %v114_v10, %v113_v9  ;;  %v115_v14 = vld [vmem:[%s470_s3 + $0x20] sm:$0xff]  ;;  %v116_v15 = vld [vmem:[%s470_s3 + $0x28] sm:$0xff]  ;;  %vm36_vm1 = vcmask 261120   ;;  %vm126_vm2 = vcmask 523264  }
   0x7   :  { %292 = vmatprep.subr.bf16.mxu1 %v355_v3  ;;  %v24_v16 = vld [vmem:[%s467_s0] sm:$0xff]  ;;  %v296_v17 = vpack.c.bf16 %v116_v15, %v115_v14  ;;  %v117_v18 = vld [vmem:[%s470_s3 + $0x30] sm:$0xff]  ;;  %v118_v19 = vld [vmem:[%s470_s3 + $0x38] sm:$0xff]  ;;  %s358_s25 = smov [#allocation2]   ;;  %vm200_vm3 = vcmask 130048   ;;  %s359_s3 = smov 112  }
   0x8   :  { %288 = vmatpush3.bf16.msra.mxu0 %v287_v11  ;;  %v299_v20 = vpack.c.bf16 %v118_v19, %v117_v18  ;;  %v235_v21 = vld [vmem:[%s469_s2] ss:$0 sm:$0xff]  ;;  %s213_s26 = sshll.u32 %s358_s25, 4  ;;  %s214_s26 = int_to_ptr.vmem [resolvable:$true] %s213_s26 }
   0x9   :  { %v237_v26 = vld [vmem:[%s471_s4] ss:$0 sm:$0xff]  ;;  %s307_s2 = scalar_lea.vmem %s214_s26, 128  ;;  %p312_p1 = scmp.lt.s32.totalorder %s214_s26, %s214_s26 }
   0xa   :  { %294 = vmatpush3.bf16.msra.mxu1 %v293_v13  ;;  %p308_p0 = scmp.ne.s32.totalorder %s214_s26, %s307_s2  ;;  %p313_p2 = scmp.lt.s32.totalorder %s307_s2, %s307_s2 }
   0xb   :  { %262 = vmatmul.mubr.msk.f32.vlgmr.msra.gmra.mrb[0].mxu0 %vm36_vm1, %v24_v16  ;;  %295 = vmatprep.subr.bf16.mxu1 %v355_v3 }
   0xc   :  { %p314_p3 = por %p313_p2, %p312_p1 }
   0xe   :  { %297 = vmatpush3.bf16.msra.mxu1 %v296_v17  ;;  %p315_p4 = pnand %p314_p3, %p308_p0 }
   0xf   :  { %298 = vmatprep.subr.bf16.mxu1 %v355_v3 }
  0x12   :  { %300 = vmatpush3.bf16.msra.mxu1 %v299_v20 }
  0xde   :  { %v106_v22 = vpop.f32.mrb[0].mxu0 }
  0xdf   :  { %v107_v23 = vadd.f32 %v235_v21, %v106_v22  ;;  %v263_v24 = vpop.f32.mrb[1].mxu0 }
  0xe1   :  { %v110_v25 = vmax.f32 %v107_v23, 0.0 }
  0xe3   :  { %281 = vmatmul.mubr.msk.f32.vlgmr.msra.gmra.mrb[0].mxu1 %vm126_vm2, %v110_v25 }
 0x1b6   :  { %v196_v27 = vpop.f32.mrb[0].mxu1 }
 0x1b7   :  { %v197_v28 = vadd.f32 %v237_v26, %v196_v27  ;;  %v282_v29 = vpop.f32.mrb[1].mxu1 }
 0x1b9   :  { %203 = vrot.lane.b32.xlu0 %v197_v28, %s359_s3  ;;  %201 = vst.msk [vmem:[#allocation2] sm:$0xff] %vm200_vm3, %v197_v28 }
 0x1ba   :  { %318 = shalt.err (!%p315_p4)
}
 0x1bb   :  { %s319_s28 = scalar_lea.hbm %s472_s5, 128 }
 0x1bc   :  { %p320_p5 = scmp.ne.s32.totalorder %s472_s5, %s319_s28  ;;  %p323_p6 = scmp.lt.u32.totalorder %s319_s28, %s472_s5 }
 0x1be   :  { %p325_p7 = pnand %p323_p6, %p320_p5 }
 0x1c0   :  { %328 = shalt.err (!%p325_p7)
}
 0x1c1   :  { %216 = dma.vmem_to_hbm [thread:$0]  %s214_s26, 128, %s472_s5, [#allocation3]  }
 0x1c2   :  { %s360_s11 = smov [#allocation4]  }
 0x1c3   :  { %s223_s12 = sshll.u32 %s360_s11, 4  ;;  %s224_s12 = int_to_ptr.vmem [resolvable:$true] %s223_s12 }
 0x1c4   :  { %s329_s1 = scalar_lea.vmem %s224_s12, 128  ;;  %p334_p9 = scmp.lt.s32.totalorder %s224_s12, %s224_s12 }
 0x1c5   :  { %p330_p8 = scmp.ne.s32.totalorder %s224_s12, %s329_s1  ;;  %p335_p10 = scmp.lt.s32.totalorder %s329_s1, %s329_s1 }
 0x1c7   :  { %p336_p11 = por %p335_p10, %p334_p9 }
 0x1c9   :  { %p337_p12 = pnand %p336_p11, %p330_p8 }
 0x22b   :  { %v204_v30 = vpop.permute.xlu0 %203 }
 0x22c   :  { %206 = vst.msk [vmem:[#allocation4] sm:$0xff] %vm200_vm3, %v204_v30 }
 0x22d   :  { %340 = shalt.err (!%p337_p12)
}
 0x22e   :  { %s341_s15 = scalar_lea.hbm %s473_s6, 128 }
 0x22f   :  { %p342_p13 = scmp.ne.s32.totalorder %s473_s6, %s341_s15  ;;  %p345_p0 = scmp.lt.u32.totalorder %s341_s15, %s473_s6 }
 0x231   :  { %p347_p1 = pnand %p345_p0, %p342_p13 }
 0x233   :  { %350 = shalt.err (!%p347_p1)
}
 0x234   :  { %226 = dma.vmem_to_hbm [thread:$0]  %s224_s12, 128, %s473_s6, [#allocation5]  }
 0x235   :  { %351 = dma.done.wait [#allocation3], 128  }
 0x236   :  { %352 = vsyncadd [#allocation3], 4294967168 }
 0x237   :  { %353 = dma.done.wait [#allocation5], 128  }
 0x238   :  { %354 = vsyncadd [#allocation5], 4294967168 }
 0x239   :  { %233 = vsyncpa [#allocation3], 1 }
 0x23a   :  { %234 = vsyncpa [#allocation5], 1 }

</bundles_post_ra>
